<compile_context>
chip_gen: v7x
topology: tpu7x:2x2x1
jax: 0.10.0
libtpu: 0.0.40
codegen_flags: <defaults>
</compile_context>

<pallas_src>
import functools

import jax
import jax.numpy as jnp
from jax import lax
from jax.experimental import pallas as pl
from jax.experimental.pallas import tpu as pltpu

_LANE = 128
_MAX_TILE_BYTES = 8 * 1024 * 1024   # never exceed ~8 MiB per input tile


def _sublane_quantum(itemsize):
    if itemsize >= 4:
        return 8      # f32 packs (8, 128)
    if itemsize == 2:
        return 16     # bf16 packs (16, 128)
    return 32         # int8 / fp8 pack (32, 128)


def _tpu_generation():
    """(vmem_capacity_bytes, num_tensorcores) with safe fallbacks."""
    vmem_cap = 128 * 1024 * 1024
    try:
        vmem_cap = int(pltpu.get_tpu_info().vmem_capacity_bytes)
    except Exception:
        pass
    kind = ""
    try:
        kind = jax.devices()[0].device_kind.lower()
    except Exception:
        pass
    # v7x: 2 TensorCores/chip, 64 MiB VMEM per TC; v5e/v6e: 1 TC, 128 MiB.
    n_tc = 2 if ("v7" in kind or vmem_cap <= 96 * 1024 * 1024) else 1
    return vmem_cap, n_tc


def _tile_budget_bytes(itemsize, vmem_cap):
    # Per-step VMEM peak ~= 2*in + 2*out (double-buffered) + f32 widening temp
    # (the xf = x.astype(f32) used by the reduce and the final multiply):
    #   f32: temp ~= 1x tile -> peak ~= 5x; bf16: 2x -> 6x; int8/fp8: 4x -> 8x.
    peak_mult = 4 + max(1, 4 // itemsize)
    # Spend at most ~half of physical VMEM on the pipeline (headroom for compiler
    # scratch). On v7x (64 MiB) this caps bf16 tiles near ~5 MiB and f32 near ~6 MiB;
    # on v5e/v6e (128 MiB) the 8 MiB ceiling binds first.
    budget = (vmem_cap // 2) // peak_mult
    return max(512 * 1024, min(_MAX_TILE_BYTES, budget))


def _pick_block_rows(R, Dp, itemsize, vmem_cap, n_tc):
    """VMEM-budgeted, sublane-aligned row tile with enough (and, on v7x, an even
    number of) grid steps for pipelining / megacore sharding."""
    sub = _sublane_quantum(itemsize)
    if R <= sub:
        # A block dim must be a sublane multiple or the full extent, so a single full
        # block is the only legal choice here (grid=(1,): runs on one TC on v7x).
        return R
    full = (R // sub) * sub
    row_bytes = max(1, Dp * itemsize)
    budget_rows = max(sub, (_tile_budget_bytes(itemsize, vmem_cap) // row_bytes) // sub * sub)
    block = min(full, budget_rows)

    # Enough steps to keep the DMA double-buffer busy (>=2 per TensorCore on v7x).
    # This only shrinks tiles for small/medium R; for large R the byte budget alone
    # already yields many steps, so tiles stay at the budget.
    min_steps = 4 if n_tc >= 2 else 3
    if pl.cdiv(R, block) < min_steps:
        block = min(block, max(sub, pl.cdiv(pl.cdiv(R, min_steps), sub) * sub))

    # v7x megacore: prefer an even step count so the "parallel" row axis splits 1:1.
    if n_tc >= 2 and block > sub:
        steps = pl.cdiv(R, block)
        if steps % 2 == 1:
            for tgt in (steps + 1, steps + 3):
                cand = min(full, max(sub, pl.cdiv(pl.cdiv(R, tgt), sub) * sub))
                if pl.cdiv(R, cand) % 2 == 0:
                    block = cand
                    break
    return block


def _normalize_tile(x, scale_f32, eps, out_dtype):
    xf = x.astype(jnp.float32)                        # no-op for f32 inputs
    sq = jnp.sum(xf * xf, axis=-1, keepdims=True)     # XLU lane reduce, f32 accum
    # clamp(||x||, eps) followed by a divide == rsqrt(max(sq, eps^2)); the rsqrt lowers
    # to the otherwise-idle EUP slot and removes the serial sqrt + divide chain.
    factor = scale_f32 * lax.rsqrt(jnp.maximum(sq, jnp.float32(eps * eps)))
    # Multiply in f32 and round once to the output dtype (VPU work is hidden under the
    # HBM DMA; avoids double rounding for bf16 and v5e's lack of a bf16 VALU).
    return (xf * factor).astype(out_dtype)


def _scale_norm_const_kernel(x_ref, o_ref, *, scale, eps):
    o_ref[...] = _normalize_tile(x_ref[...], jnp.float32(scale), eps, o_ref.dtype)


def _scale_norm_prefetch_kernel(scale_ref, x_ref, o_ref, *, eps):
    o_ref[...] = _normalize_tile(x_ref[...], scale_ref[0], eps, o_ref.dtype)


def scale_norm(x, scale, eps=1e-5, block_rows=None):
    """ScaleNorm forward: x * (scale / clamp(||x||_2 along dim=-1, min=eps))."""
    orig_shape = x.shape
    D = x.shape[-1]
    x2 = x.reshape(-1, D)
    R = x2.shape[0]

    itemsize = jnp.dtype(x.dtype).itemsize
    sub = _sublane_quantum(itemsize)
    vmem_cap, n_tc = _tpu_generation()

    # Lane-dense output: pad the feature axis up to a multiple of 128 when needed.
    # Zero padding does not change the L2 norm; production hidden dims (multiples of
    # 128) take the no-pad path.
    Dp = pl.cdiv(D, _LANE) * _LANE
    if Dp != D:
        x2 = jnp.pad(x2, ((0, 0), (0, Dp - D)))

    if block_rows is None:
        block_rows = _pick_block_rows(R, Dp, itemsize, vmem_cap, n_tc)
    else:
        block_rows = R if R <= sub else min((R // sub) * sub,
                                            max(sub, (block_rows // sub) * sub))

    # TODO(synk): for very large D (sub * Dp * itemsize >> VMEM budget), split D over a
    # second "arbitrary" grid axis with a small scratch accumulating sq + finalize pass.

    grid = (pl.cdiv(R, block_rows),)   # partial last row tile is masked by Pallas

    # vmem limit from actual usage (double-buffered in/out + f32 temp) + slack.
    tile_bytes = block_rows * Dp * itemsize
    peak_bytes = (4 + max(1, 4 // itemsize)) * tile_bytes
    vmem_limit = int(max(16 * 1024 * 1024,
                         min(vmem_cap - 8 * 1024 * 1024,
                             peak_bytes + 8 * 1024 * 1024)))
    cparams = pltpu.CompilerParams(
        dimension_semantics=("parallel",),   # rows independent -> megacore shardable
        vmem_limit_bytes=vmem_limit,
    )
    out_shape = jax.ShapeDtypeStruct((R, Dp), x.dtype)

    try:
        static_scale = float(scale)          # Python / NumPy / concrete-JAX scalar
    except Exception:
        static_scale = None                  # traced parameter

    if static_scale is not None:
        # Bake the scalar into the kernel: no per-step SMEM operand at all.
        out = pl.pallas_call(
            functools.partial(_scale_norm_const_kernel,
                              scale=static_scale, eps=float(eps)),
            out_shape=out_shape,
            grid=grid,
            in_specs=[pl.BlockSpec((block_rows, Dp), lambda i: (i, 0))],
            out_specs=pl.BlockSpec((block_rows, Dp), lambda i: (i, 0)),
            compiler_params=cparams,
        )(x2)
    else:
        # Traced parameter: scalar-prefetch it once into SMEM before the grid runs.
        scale_arr = jnp.asarray(scale, jnp.float32).reshape((1,))
        out = pl.pallas_call(
            functools.partial(_scale_norm_prefetch_kernel, eps=float(eps)),
            out_shape=out_shape,
            grid_spec=pltpu.PrefetchScalarGridSpec(
                num_scalar_prefetch=1,
                grid=grid,
                in_specs=[pl.BlockSpec((block_rows, Dp), lambda i, s: (i, 0))],
                out_specs=pl.BlockSpec((block_rows, Dp), lambda i, s: (i, 0)),
            ),
            compiler_params=cparams,
        )(scale_arr, x2)

    if Dp != D:
        out = out[:, :D]
    return out.reshape(orig_shape)


if __name__ == "__main__":
    key = jax.random.PRNGKey(0)
    # Module forward implies [..., hidden]; use batch=2, seq=8, hidden=32.
    B, S, H = 2, 8, 32
    x = jax.random.normal(key, (B, S, H), dtype=jnp.float32)

    scale = float(jnp.sqrt(jnp.float32(H)))   # typical init: sqrt(hidden)
    eps = 1e-5

    def ref_fn(xx, s):
        xf = xx.astype(jnp.float32)
        norm = jnp.linalg.norm(xf, axis=-1, keepdims=True)
        return (xf * (s / jnp.maximum(norm, eps))).astype(xx.dtype)

    # Path 1: Python-float scale baked into the kernel (matches module's forward).
    y = jax.block_until_ready(scale_norm(x, scale, eps=eps))
    assert y.shape == x.shape and y.dtype == x.dtype
    assert jnp.allclose(y, ref_fn(x, scale), atol=1e-4, rtol=1e-4), "float-scale mismatch"

    # Path 2: parameter-style (traced) scale via scalar prefetch, under jit.
    scale_param = jnp.asarray(scale, jnp.float32)
    y2 = jax.block_until_ready(
        jax.jit(lambda xx, ss: scale_norm(xx, ss, eps=eps))(x, scale_param))
    assert jnp.allclose(y2, ref_fn(x, scale), atol=1e-4, rtol=1e-4), "param-scale mismatch"

    # Path 3: bf16 input (f32 accumulation, single rounding at the end).
    xb = x.astype(jnp.bfloat16)
    yb = jax.block_until_ready(scale_norm(xb, scale, eps=eps))
    assert yb.dtype == jnp.bfloat16
    assert jnp.allclose(yb.astype(jnp.float32), ref_fn(xb, scale).astype(jnp.float32),
                        atol=3e-2, rtol=3e-2), "bf16 mismatch"

    print("KERNEL_OK")
</pallas_src>

<mosaic_0001>
module attributes {stable_mosaic.version = 11 : i64} {
  func.func @_scale_norm_const_kernel(%arg0: i32, %arg1: memref<8x128xf32, #tpu.memory_space<vmem>>, %arg2: memref<8x128xf32, #tpu.memory_space<vmem>>) attributes {dimension_semantics = [#tpu.dimension_semantics<parallel>], iteration_bounds = array<i64: 2>, scalar_prefetch = 0 : i64, scratch_operands = 0 : i64, tpu.core_type = #tpu.core_type<tc>, window_params = [{transform_indices = @transform_0, window_bounds = array<i64: 8, 128>}, {transform_indices = @transform_1, window_bounds = array<i64: 8, 128>}]} {
    %c0 = arith.constant 0 : index
    %c0_0 = arith.constant 0 : index
    %0 = vector.load %arg1[%c0, %c0_0] : memref<8x128xf32, #tpu.memory_space<vmem>>, vector<8x128xf32>
    %1 = arith.mulf %0, %0 : vector<8x128xf32>
    %cst = arith.constant dense<0.000000e+00> : vector<8xf32>
    %2 = vector.multi_reduction <add>, %1, %cst [1] : vector<8x128xf32> to vector<8xf32>
    %3 = vector.shape_cast %2 : vector<8xf32> to vector<8x1xf32>
    %cst_1 = arith.constant 1.000000e-10 : f32
    %4 = vector.broadcast %cst_1 : f32 to vector<8x1xf32>
    %5 = arith.maximumf %3, %4 : vector<8x1xf32>
    %6 = math.rsqrt %5 : vector<8x1xf32>
    %cst_2 = arith.constant 5.65685415 : f32
    %7 = vector.broadcast %cst_2 : f32 to vector<8x1xf32>
    %8 = arith.mulf %7, %6 : vector<8x1xf32>
    %9 = vector.broadcast %8 : vector<8x1xf32> to vector<8x128xf32>
    %10 = arith.mulf %0, %9 : vector<8x128xf32>
    %c0_3 = arith.constant 0 : index
    %c0_4 = arith.constant 0 : index
    %11 = vector.load %arg2[%c0_3, %c0_4] : memref<8x128xf32, #tpu.memory_space<vmem>>, vector<8x128xf32>
    tpu.vector_store %arg2[%c0_3, %c0_4], %10 {strides = array<i32>} : memref<8x128xf32, #tpu.memory_space<vmem>>, vector<8x128xf32>,
    return
  }
  func.func @transform_0(%arg0: i32) -> (i32, i32) {
    %c0_i32 = arith.constant 0 : i32
    %c0_i32_0 = arith.constant 0 : i32
    return %arg0, %c0_i32 : i32, i32
  }
  func.func @transform_1(%arg0: i32) -> (i32, i32) {
    %c0_i32 = arith.constant 0 : i32
    %c0_i32_0 = arith.constant 0 : i32
    return %arg0, %c0_i32 : i32, i32
  }
}

</mosaic_0001>

<bundles_post_ra>
// kernel: tpu_custom_call.1
= control target key start
LH: loop header
LB: loop body
LE: loop exit
PB: predicated region body
PF: predicated region fallthrough
CT: control target
= control target key end

     0   :  { %6 = vsyncpa [#allocation3], 0  ;;  %s556_s0 = inlined_call_operand.hbm [shape: f32[16,128], index: 0, kind: input, shape index: {}]   ;;  %s557_s1 = inlined_call_operand.hbm [shape: f32[16,128], index: 1, kind: output, shape index: {}]  }
   0x1   :  { %8 = vsyncpa [#allocation3 + $0x1], 0 }
   0x2   :  { %9 = vsyncpa [#allocation4], 0 }
   0x3   :  { %11 = vsyncpa [#allocation4 + $0x1], 0  ;;  %s395_s6 = smov 0   ;;  %s397_s7 = smov 0  }
   0x4   :  { %s399_s8 = smov 0   ;;  %s401_s9 = smov 0  }
   0x5 LB: > { %s416_s10 = sadd.s32 4294967295, %s381_s9   ;;  %s225_s11 = sadd.s32 4294967294, %s381_s9   ;;  %s381_s9 = sphi %s401_s9, %s572_s9   ;;  %s377_s8 = sphi %s399_s8, %s571_s8   ;;  %s373_s7 = sphi %s397_s7, %s570_s7   ;;  %s369_s6 = sphi %s395_s6, %s569_s6  }
   0x6   : > { %s420_s12 = sadd.s32 1, %s381_s9   ;;  %s24_s13 = sadd.s32 1, %s377_s8 }
   0x7   : > { %s21_s14 = ssub.s32 %s381_s9, %s420_s12  ;;  %p31_p0 = scmp.ne.s32.totalorder %s377_s8, %s373_s7 }
   0x8   : > { %p22_p1 = scmp.eq.s32.totalorder %s21_s14, 0  ;;  %p32_p2 = scmp.eq.s32.totalorder %s381_s9, 0 }
   0x9   : > { %p37_p3 = scmp.ne.s32.totalorder %s373_s7, %s369_s6  ;;  %p38_p4 = scmp.eq.s32.totalorder %s416_s10, 0 }
   0xa   : > { %s432_s15 = scalar_select %p22_p1, %s377_s8, %s24_s13  }
   0xb   : > { %p434_p5 = por %p32_p2, %p31_p0  ;;  %p438_p6 = por %p38_p4, %p37_p3 }
   0xc   : > { %p61_p7 = scmp.eq.s32.totalorder %s416_s10, 1  ;;  %p67_p8 = scmp.eq.s32.totalorder %s225_s11, 1 }
   0xd   : > { %p249_p10 = scmp.lt.s32.totalorder %s381_s9, 2  ;;  %s87_s20 = sand.u32 1, %s377_s8  }
   0xe   : > { %p445_p11 = por %p61_p7, %p31_p0  ;;  %p449_p12 = por %p67_p8, %p37_p3 }
   0xf   : > { %s229_s21 = sshll.u32 %s381_s9, 7  ;;  %s228_s22 = sshll.u32 %s87_s20, 3 }
  0x10   : > { %s561_s18 = scalar_select %p445_p11, 1, 0 }
  0x11   : > { %s562_s19 = scalar_select %p449_p12, 1, 0 }
  0x12   : > { %s458_s25 = scalar_lea.hbm %s556_s0, %s229_s21  ;;  %s91_s26 = scalar_lea.vmem [#allocation2], %s228_s22 }
  0x13   : > { %s98_s27 = sshll.u32 %s91_s26, 4  ;;  %p462_p13 = pnand %p249_p10, %p434_p5  ;;  %s466_s27 = int_to_ptr.vmem [resolvable:$true] %s98_s27 }
  0x14   : > { %s88_s29 = scalar_lea.sflag [#allocation3], %s87_s20  ;;  %s285_s30 = scalar_lea.hbm %s458_s25, 128 }
  0x15   : > { %p286_p2 = scmp.ne.s32.totalorder %s458_s25, %s285_s30  ;;  %p287_p3 = pneg %p462_p13 }
  0x16   : > { %s290_s4 = scalar_lea.hbm %s556_s0, 256  ;;  %p291_p5 = scmp.lt.u32.totalorder %s458_s25, %s556_s0 }
  0x17   : > { %p288_p4 = pnand %p287_p3, %p286_p2  ;;  %p292_p8 = scmp.lt.u32.totalorder %s290_s4, %s285_s30 }
  0x18   : > { %p294_p9 = scmp.lt.u32.totalorder %s285_s30, %s458_s25 }
  0x19   : > { %p289_p7 = pneg %p288_p4  ;;  %p293_p10 = por %p292_p8, %p291_p5 }
  0x1b   : > { %p295_p0 = por %p294_p9, %p293_p10 }
  0x1d   : > { %p296_p1 = pnand %p295_p0, %p289_p7 }
  0x1f   : > { %299 = shalt.err (!%p296_p1)
}
  0x20   : > { %s300_s13 = scalar_lea.vmem %s466_s27, 128  ;;  %s383_s14 = smov [#allocation2]  }
  0x21   : > { %p301_p2 = scmp.ne.s32.totalorder %s466_s27, %s300_s13  ;;  %s305_s16 = sshll.u32 %s383_s14, 4  ;;  %s306_s16 = int_to_ptr.vmem [resolvable:$false] %s305_s16 }
  0x22   : > { %s307_s20 = scalar_lea.vmem %s306_s16, 256  ;;  %p308_p11 = scmp.lt.s32.totalorder %s466_s27, %s306_s16 }
  0x23   : > { %p303_p4 = pnand %p301_p2, %p287_p3  ;;  %p309_p5 = scmp.lt.s32.totalorder %s307_s20, %s300_s13 }
  0x25   : > { %p304_p12 = pneg %p303_p4  ;;  %p310_p8 = por %p309_p5, %p308_p11 }
  0x27   : > { %p311_p9 = pnand %p310_p8, %p304_p12 }
  0x29   : > { %314 = shalt.err (!%p311_p9)
}
  0x2a   : > { %244 = dma.hbm_to_vmem [thread:$0]  (!%p462_p13), %s458_s25, 128, %s466_s27, %s88_s29  }
  0x2b   : > { %p564_p0 = scmp.lt.s32.totalorder %s381_s9, 3  ;;  %p565_p1 = scmp.ge.s32.totalorder %s381_s9, 1 }
  0x2d   : > { %p104_p3 = pnand %p565_p1, %p564_p0 }
  0x2e   : > { %s500_s21 = sand.u32 (!%p104_p3), 1, %s373_s7  }
  0x2f   : > { %107 = sbr.rel (%p104_p3) target bundleno = 231 (0xe7), region = 24  ;;  %s231_s22 = sshll.u32 (!%p104_p3), %s500_s21, 3 }
  0x30   : > { %s110_s23 = scalar_lea.sflag (!%p104_p3), [#allocation3], %s500_s21  ;;  %s113_s24 = scalar_lea.vmem (!%p104_p3), [#allocation2], %s231_s22 }
  0x36   : > { %360 = dma.done.wait (%p438_p6), %s110_s23, 128  }
  0x37   : > { %362 = vsyncadd (%p438_p6), %s110_s23, 4294967168  ;;  %v132_v0 = vld [vmem:[%s113_s24] sm:$0xff]  ;;  %s234_s25 = sshll.u32 %s416_s10, 7  ;;  %s131_s26 = scalar_lea.vmem [#allocation5], %s231_s22 }
  0x38   : > { %v133_v1 = vmul.f32 %v132_v0, %v132_v0  ;;  %s155_s27 = sshll.u32 %s131_s26, 4  ;;  %s512_s17 = scalar_lea.hbm %s557_s1, %s234_s25  ;;  %s514_s27 = int_to_ptr.vmem [resolvable:$true] %s155_s27 }
  0x39   : > { %s142_s30 = scalar_lea.sflag [#allocation4], %s500_s21  ;;  %s315_s2 = scalar_lea.vmem %s514_s27, 128 }
  0x3a   : > { %134 = vadd.xlane.f32.xlu0 %v133_v1  ;;  %p316_p6 = scmp.ne.s32.totalorder %s514_s27, %s315_s2  ;;  %p566_p11 = scmp.ne.s32.totalorder %s561_s18, 0 }
  0x3b   : > { %s384_s10 = smov [#allocation5]  }
  0x3c   : > { %p317_p12 = pnand %p316_p6, %p566_p11  ;;  %s319_s3 = sshll.u32 %s384_s10, 4  ;;  %s320_s3 = int_to_ptr.vmem [resolvable:$false] %s319_s3 }
  0x3d   : > { %s321_s4 = scalar_lea.vmem %s320_s3, 256  ;;  %p322_p7 = scmp.lt.s32.totalorder %s514_s27, %s320_s3 }
  0x3e   : > { %p318_p13 = pneg %p317_p12  ;;  %p323_p10 = scmp.lt.s32.totalorder %s321_s4, %s315_s2 }
  0x40   : > { %p324_p2 = por %p323_p10, %p322_p7 }
  0x42   : > { %p325_p4 = pnand %p324_p2, %p318_p13 }
  0xc7   : > { %v135_v2 = vpop.xlane.xlu0 %134 }
  0xc8   : > { %v136_v3 = vmax.f32 %v135_v2, 1e-10 }
  0xca   : > { %283 = vrsqrt.f32 %v136_v3 }
  0xd4   : > { %v284_v4 = vpop.eup %283 }
  0xd5   : > { %v138_v5 = vmul.f32 5.656854, %v284_v4 }
  0xd7   : > { %v139_v6 = vmul.f32 %v138_v5, %v132_v0 }
  0xd9   : > { %140 = vst [vmem:[%s131_s26] sm:$0xff] %v139_v6 }
  0xda   : > { %328 = shalt.err (!%p325_p4)
}
  0xdb   : > { %s329_s5 = scalar_lea.hbm %s512_s17, 128  ;;  %s333_s14 = scalar_lea.hbm %s557_s1, 256 }
  0xdc   : > { %p330_p5 = scmp.ne.s32.totalorder %s512_s17, %s329_s5  ;;  %p334_p0 = scmp.lt.u32.totalorder %s512_s17, %s557_s1 }
  0xdd   : > { %p335_p1 = scmp.lt.u32.totalorder %s333_s14, %s329_s5  ;;  %p337_p6 = scmp.lt.u32.totalorder %s329_s5, %s512_s17 }
  0xde   : > { %p331_p8 = pnand %p330_p5, %p566_p11 }
  0xdf   : > { %p336_p3 = por %p335_p1, %p334_p0 }
  0xe0   : > { %p332_p9 = pneg %p331_p8 }
  0xe1   : > { %p338_p12 = por %p337_p6, %p336_p3 }
  0xe3   : > { %p339_p13 = pnand %p338_p12, %p332_p9 }
  0xe5   : > { %342 = shalt.err (!%p339_p13)
}
  0xe6   : > { %239 = dma.vmem_to_hbm [thread:$0]  (%p566_p11), %s514_s27, 128, %s512_s17, %s142_s30  }
  0xe7 PF: > { %s167_s21 = sand.u32 1, %s369_s6   ;;  %p567_p7 = scmp.ne.s32.totalorder %s562_s19, 0 }
  0xe8   : > { %p568_p10 = scmp.ge.s32.totalorder %s381_s9, 2  ;;  %s168_s22 = scalar_lea.sflag [#allocation4], %s167_s21 }
  0xea   : > { %p246_p2 = pnand %p568_p10, %p567_p7 }
  0xec   : > { %364 = dma.done.wait (!%p246_p2), %s168_s22, 128  }
  0xed   : > { %366 = vsyncadd (!%p246_p2), %s168_s22, 4294967168  ;;  %p14_p4 = scmp.ge.s32.totalorder %s420_s12, 4   ;;  %s569_s6 = smov %s373_s7 }
  0xee   : > { %s570_s7 = smov %s377_s8  ;;  %s571_s8 = smov %s432_s15 }
  0xef   : > { %s572_s9 = smov %s420_s12  ;;  %16 = sbr.rel (!%p14_p4) target bundleno = 5 (0x5), region = 69 }
  0xf6   :  { %173 = vsyncpa [#allocation3], 1 }
  0xf7   :  { %175 = vsyncpa [#allocation3 + $0x1], 1 }
  0xf8   :  { %176 = vsyncpa [#allocation4], 1 }
  0xf9   :  { %178 = vsyncpa [#allocation4 + $0x1], 1 }

</bundles_post_ra>
